<compile_context>
chip_gen: v6e
topology: v6e:2x2x1
jax: 0.10.0
libtpu: 0.0.40
codegen_flags: <defaults>
</compile_context>

<pallas_src>
import jax
import jax.numpy as jnp
from jax.experimental import pallas as pl
from jax.experimental.pallas import tpu as pltpu


# ----------------------------------------------------------------------------
# Pallas kernel: one (batch, spatial-tile) block of  Y = W @ X + b
# ----------------------------------------------------------------------------
def conv1x1_kernel(x_ref, w_ref, b_ref, o_ref):
    # x_ref: (Cin, TILE_S), w_ref: (Cout, Cin), b_ref: (Cout, 1),
    # o_ref: (Cout, TILE_S)
    acc = jnp.dot(w_ref[...], x_ref[...], preferred_element_type=jnp.float32)
    o_ref[...] = (acc + b_ref[...]).astype(o_ref.dtype)


def _pad_to(x, mult):
    return ((x + mult - 1) // mult) * mult


def _choose_tile_s(s, cin, cout, itemsize, budget_bytes):
    """Largest lane-dense spatial tile whose double-buffered footprint fits
    `budget_bytes`.  Prefers tiles that divide S exactly (no padding)."""
    # Double-buffered x block + out block; channel dim pads to 8 sublanes.
    bytes_per_col = 2 * (_pad_to(cin, 8) + _pad_to(cout, 8)) * itemsize
    max_tile = max(128, budget_bytes // bytes_per_col)
    if s <= max_tile:
        return s, 0                       # full extent, no (8,128) constraint
    t = (max_tile // 128) * 128
    while t >= 128:                       # largest 128-multiple dividing S
        if s % t == 0:
            return t, 0
        t -= 128
    # Rare fallback (S has no suitable divisor): pad S along the last axis.
    t = (max_tile // 128) * 128
    return t, (-s) % t


# ----------------------------------------------------------------------------
# Wrapper: 1x1x1 Conv3d on PyTorch-style NCDHW input
# ----------------------------------------------------------------------------
def conv3d_1x1x1(x, weight, bias, *, vmem_budget_bytes=8 << 20):
    """x: (N, Cin, D, H, W); weight: (Cout, Cin) [from PyTorch
    (Cout, Cin, 1, 1, 1)]; bias: (Cout,).  Returns (N, Cout, D, H, W),
    same dtype as x."""
    n, cin, d, h, w = x.shape
    cout = weight.shape[0]
    s = d * h * w

    xr = x.reshape(n, cin, s)                           # free contiguous view
    itemsize = jnp.dtype(x.dtype).itemsize
    tile_s, pad = _choose_tile_s(s, cin, cout, itemsize, vmem_budget_bytes)
    if pad:
        xr = jnp.pad(xr, ((0, 0), (0, 0), (0, pad)))    # rare path only
    s_pad = s + pad
    n_tiles = s_pad // tile_s

    w_mat = weight.astype(x.dtype)                      # (Cout, Cin), resident
    b_mat = bias.reshape(cout, 1).astype(jnp.float32)   # (Cout, 1),   resident

    out = pl.pallas_call(
        conv1x1_kernel,
        out_shape=jax.ShapeDtypeStruct((n, cout, s_pad), x.dtype),
        grid=(n, n_tiles),
        in_specs=[
            pl.BlockSpec((None, cin, tile_s), lambda i, j: (i, 0, j)),
            pl.BlockSpec((cout, cin), lambda i, j: (0, 0)),   # resident weight
            pl.BlockSpec((cout, 1), lambda i, j: (0, 0)),     # resident bias
        ],
        out_specs=pl.BlockSpec((None, cout, tile_s), lambda i, j: (i, 0, j)),
        compiler_params=pltpu.CompilerParams(
            dimension_semantics=("parallel", "parallel")),
    )(xr, w_mat, b_mat)

    if pad:
        out = out[:, :, :s]
    return out.reshape(n, cout, d, h, w)                # free view back to NCDHW


# ----------------------------------------------------------------------------
# Module: Out(in_channels, out_channels) == Conv3d(cin, cout, kernel_size=1)
# ----------------------------------------------------------------------------
def init_out_params(key, in_channels, out_channels):
    kw, kb = jax.random.split(key)
    # PyTorch Conv3d default init: U(-s, s), s = 1/sqrt(fan_in), fan_in = cin
    bound = 1.0 / jnp.sqrt(jnp.float32(in_channels))
    weight = jax.random.uniform(kw, (out_channels, in_channels),
                                jnp.float32, -bound, bound)
    bias = jax.random.uniform(kb, (out_channels,), jnp.float32, -bound, bound)
    return {"weight": weight, "bias": bias}


def out_forward(params, x):
    return conv3d_1x1x1(x, params["weight"], params["bias"])


# ----------------------------------------------------------------------------
if __name__ == "__main__":
    in_channels, out_channels = 4, 8
    N, D, H, W = 2, 16, 16, 16

    key = jax.random.PRNGKey(0)
    kp, kx = jax.random.split(key)
    params = init_out_params(kp, in_channels, out_channels)
    x = jax.random.normal(kx, (N, in_channels, D, H, W), jnp.float32)

    fwd = jax.jit(out_forward)
    y = jax.block_until_ready(fwd(params, x))

    assert y.shape == (N, out_channels, D, H, W), y.shape
    assert y.dtype == x.dtype, y.dtype
    assert bool(jnp.all(jnp.isfinite(y)))

    # Reference check against plain XLA (same math: per-voxel matmul + bias).
    ref = jnp.einsum("ncdhw,oc->nodhw", x, params["weight"]) \
        + params["bias"][None, :, None, None, None]
    assert bool(jnp.allclose(y, ref, rtol=1e-3, atol=1e-3)), \
        float(jnp.max(jnp.abs(y - ref)))

    print("KERNEL_OK")
</pallas_src>

<mosaic_0001>
module attributes {stable_mosaic.version = 11 : i64} {
  func.func @conv1x1_kernel(%arg0: i32, %arg1: i32, %arg2: memref<1x4x4096xf32, #tpu.memory_space<vmem>>, %arg3: memref<8x4xf32, #tpu.memory_space<vmem>>, %arg4: memref<8x1xf32, #tpu.memory_space<vmem>>, %arg5: memref<1x8x4096xf32, #tpu.memory_space<vmem>>) attributes {dimension_semantics = [#tpu.dimension_semantics<parallel>, #tpu.dimension_semantics<parallel>], iteration_bounds = array<i64: 2, 1>, scalar_prefetch = 0 : i64, scratch_operands = 0 : i64, tpu.core_type = #tpu.core_type<tc>, window_params = [{transform_indices = @transform_0, window_bounds = array<i64: 1, 4, 4096>}, {pipeline_mode = #tpu.pipeline_mode<synchronous>, transform_indices = @transform_1, window_bounds = array<i64: 8, 4>}, {pipeline_mode = #tpu.pipeline_mode<synchronous>, transform_indices = @transform_2, window_bounds = array<i64: 8, 1>}, {transform_indices = @transform_3, window_bounds = array<i64: 1, 8, 4096>}]} {
    %c0 = arith.constant 0 : index
    %c0_0 = arith.constant 0 : index
    %0 = vector.load %arg3[%c0, %c0_0] : memref<8x4xf32, #tpu.memory_space<vmem>>, vector<8x4xf32>
    %c0_1 = arith.constant 0 : index
    %c0_2 = arith.constant 0 : index
    %c0_3 = arith.constant 0 : index
    %1 = vector.load %arg2[%c0_1, %c0_2, %c0_3] : memref<1x4x4096xf32, #tpu.memory_space<vmem>>, vector<1x4x4096xf32>
    %2 = vector.shape_cast %1 : vector<1x4x4096xf32> to vector<4x4096xf32>
    %cst = arith.constant dense<0.000000e+00> : vector<8x4096xf32>
    %3 = tpu.matmul %0, %2, %cst {dimension_numbers = #tpu.dot_dimension_numbers<[1], [0], [0], [1], [0, 0, 1, 1], [], []>} : vector<8x4xf32>, vector<4x4096xf32>, vector<8x4096xf32> -> vector<8x4096xf32>
    %c0_4 = arith.constant 0 : index
    %c0_5 = arith.constant 0 : index
    %4 = vector.load %arg4[%c0_4, %c0_5] : memref<8x1xf32, #tpu.memory_space<vmem>>, vector<8x1xf32>
    %5 = vector.broadcast %4 : vector<8x1xf32> to vector<8x4096xf32>
    %6 = arith.addf %3, %5 : vector<8x4096xf32>
    %c0_6 = arith.constant 0 : index
    %c0_7 = arith.constant 0 : index
    %c0_8 = arith.constant 0 : index
    %7 = vector.load %arg5[%c0_6, %c0_7, %c0_8] : memref<1x8x4096xf32, #tpu.memory_space<vmem>>, vector<1x8x4096xf32>
    %8 = vector.shape_cast %7 : vector<1x8x4096xf32> to vector<8x4096xf32>
    %9 = vector.shape_cast %6 : vector<8x4096xf32> to vector<1x8x4096xf32>
    tpu.vector_store %arg5[%c0_6, %c0_7, %c0_8], %9 {strides = array<i32>} : memref<1x8x4096xf32, #tpu.memory_space<vmem>>, vector<1x8x4096xf32>,
    return
  }
  func.func @transform_0(%arg0: i32, %arg1: i32) -> (i32, i32, i32) {
    %c0_i32 = arith.constant 0 : i32
    %c0_i32_0 = arith.constant 0 : i32
    return %arg0, %c0_i32, %arg1 : i32, i32, i32
  }
  func.func @transform_1(%arg0: i32, %arg1: i32) -> (i32, i32) {
    %c0_i32 = arith.constant 0 : i32
    %c0_i32_0 = arith.constant 0 : i32
    %c0_i32_1 = arith.constant 0 : i32
    return %c0_i32, %c0_i32_0 : i32, i32
  }
  func.func @transform_2(%arg0: i32, %arg1: i32) -> (i32, i32) {
    %c0_i32 = arith.constant 0 : i32
    %c0_i32_0 = arith.constant 0 : i32
    %c0_i32_1 = arith.constant 0 : i32
    return %c0_i32, %c0_i32_0 : i32, i32
  }
  func.func @transform_3(%arg0: i32, %arg1: i32) -> (i32, i32, i32) {
    %c0_i32 = arith.constant 0 : i32
    %c0_i32_0 = arith.constant 0 : i32
    return %arg0, %c0_i32, %arg1 : i32, i32, i32
  }
}

</mosaic_0001>

<bundles_post_ra>
// kernel: out_forward.1
= control target key start
LH: loop header
LB: loop body
LE: loop exit
PB: predicated region body
PF: predicated region fallthrough
CT: control target
= control target key end

     0   :  { %s1739_s12 = smov 0   ;;  %s1741_s13 = smov 0   ;;  %s1950_s0 = inlined_call_operand.vmem [shape: f32[2,4,4096], index: 0, kind: input, shape index: {}]   ;;  %s1951_s1 = inlined_call_operand.vmem [shape: f32[8,4], index: 1, kind: input, shape index: {}]   ;;  %s1952_s2 = inlined_call_operand.vmem [shape: f32[8,1], index: 2, kind: input, shape index: {}]   ;;  %s1953_s3 = inlined_call_operand.vmem [shape: f32[2,8,4096], index: 3, kind: output, shape index: {}]  }
   0x1   :  { %s1743_s14 = smov 0  }
   0x2 LB: > { %s25_s15 = sadd.s32 1, %s1711_s13  ;;  %p1593_p0 = scmp.ge.s32.totalorder %s1715_s14, 1  ;;  %s1715_s14 = sphi %s1743_s14, %s13_s14   ;;  %s1711_s13 = sphi %s1741_s13, %s1955_s13   ;;  %s1707_s12 = sphi %s1739_s12, %s1954_s12  }
   0x3   : > { %p27_p1 = scmp.ge.s32.totalorder %s25_s15, 2  ;;  %p158_p2 = scmp.lt.s32.totalorder %s1715_s14, 3 }
   0x5   : > { %s1957_s15 = smov (%p27_p1, %s25_s15), 0  ;;  %p159_p3 = pnand %p1593_p0, %p158_p2 }
   0x6   : > { %p191_p4 = scmp.lt.s32.totalorder (!%p159_p3), %s1707_s12, 1 }
   0x7   : > { %162 = sbr.rel (%p159_p3) target bundleno = 246 (0xf6), region = 32 }
   0xc   : > { %v1717_v0 = vmov 0.0   ;;  %v227_v1 = vld [vmem:[%s1952_s2] sm:$0xff]  ;;  %s1959_s12 = smov (!%p191_p4, %s1707_s12), 1  ;;  %v1718_v2 = vmov 0   ;;  %vm269_vm0 = vcmask 1043456   ;;  %vm265_vm1 = vcmask 31744  }
   0xd   : > { %398 = vmatprep.mubr.f32.mxu0 %v1717_v0  ;;  %469 = vmatprep.mubr.f32.mxu1 %v1717_v0  ;;  %s1648_s18 = sshll.u32 %s1959_s12, 7  ;;  %v1777_v9 = vld [vmem:[%s1951_s1] sm:$0xff]  ;;  %s1649_s24 = sshll.u32 %s1959_s12, 8 }
   0xe   : > { %1676 = vset.pattern.permute.xlu0 %v1718_v2  ;;  %s1768_s21 = scalar_lea.vmem %s1950_s0, %s1648_s18  ;;  %s1875_s27 = scalar_lea.vmem %s1953_s3, %s1649_s24 }
   0xf   : > { %230 = vperm.xlu0 %1676, %v227_v1   ;;  %v211_v3 = vld [vmem:[%s1768_s21] sm:$0xff]  ;;  %v212_v4 = vld [vmem:[%s1768_s21 + $0x8] sm:$0xff]  ;;  %v213_v5 = vld [vmem:[%s1768_s21 + $0x10] sm:$0xff] }
  0x10   : > { %v249_v6 = vcombine.high %v211_v3, %v211_v3  ;;  %v250_v7 = vcombine.high %v212_v4, %v212_v4  ;;  %v214_v8 = vld [vmem:[%s1768_s21 + $0x18] sm:$0xff]  ;;  %v251_v10 = vcombine.high %v213_v5, %v213_v5  ;;  %v215_v12 = vld [vmem:[%s1768_s21 + $0x20] sm:$0xff]  ;;  %v216_v13 = vld [vmem:[%s1768_s21 + $0x28] sm:$0xff] }
  0x11   : > { %v252_v11 = vcombine.high %v214_v8, %v214_v8  ;;  %v253_v14 = vcombine.high %v215_v12, %v215_v12  ;;  %v254_v15 = vcombine.high %v216_v13, %v216_v13  ;;  %v217_v16 = vld [vmem:[%s1768_s21 + $0x30] sm:$0xff]  ;;  %v218_v17 = vld [vmem:[%s1768_s21 + $0x38] sm:$0xff]  ;;  %v219_v20 = vld [vmem:[%s1768_s21 + $0x40] sm:$0xff] }
  0x12   : > { %1598 = vmatprep.subr.msk.mxu0 %vm269_vm0, %v249_v6  ;;  %1601 = vmatprep.subr.msk.mxu1 %vm269_vm0, %v250_v7  ;;  %v255_v18 = vcombine.high %v217_v16, %v217_v16  ;;  %v256_v19 = vcombine.high %v218_v17, %v218_v17  ;;  %v220_v21 = vld [vmem:[%s1768_s21 + $0x48] sm:$0xff]  ;;  %v257_v22 = vcombine.high %v219_v20, %v219_v20  ;;  %v221_v24 = vld [vmem:[%s1768_s21 + $0x50] sm:$0xff]  ;;  %v222_v25 = vld [vmem:[%s1768_s21 + $0x58] sm:$0xff] }
  0x13   : > { %1599 = vmatpush1.msk.msra.mxu0 %vm269_vm0, %v211_v3  ;;  %1602 = vmatpush1.msk.msra.mxu1 %vm269_vm0, %v212_v4  ;;  %v258_v23 = vcombine.high %v220_v21, %v220_v21  ;;  %v259_v26 = vcombine.high %v221_v24, %v221_v24  ;;  %v260_v27 = vcombine.high %v222_v25, %v222_v25  ;;  %v223_v28 = vld [vmem:[%s1768_s21 + $0x60] sm:$0xff]  ;;  %v224_v29 = vld [vmem:[%s1768_s21 + $0x68] sm:$0xff]  ;;  %v225_v32 = vld [vmem:[%s1768_s21 + $0x70] sm:$0xff] }
  0x14   : > { %1600 = vmatmul.mubr.msk.f32.vlgmr.msra.gmra.mxu0 %vm265_vm1, %v1777_v9  ;;  %1603 = vmatmul.mubr.msk.f32.vlgmr.msra.gmra.mxu1 %vm265_vm1, %v1777_v9  ;;  %v261_v30 = vcombine.high %v223_v28, %v223_v28  ;;  %v262_v31 = vcombine.high %v224_v29, %v224_v29  ;;  %v226_v33 = vld [vmem:[%s1768_s21 + $0x78] sm:$0xff]  ;;  %v263_v34 = vcombine.high %v225_v32, %v225_v32 }
  0x15   : > { %1604 = vmatprep.subr.msk.mxu0 %vm269_vm0, %v251_v10  ;;  %1607 = vmatprep.subr.msk.mxu1 %vm269_vm0, %v252_v11  ;;  %v264_v35 = vcombine.high %v226_v33, %v226_v33 }
  0x16   : > { %1605 = vmatpush1.msk.msra.mxu0 %vm269_vm0, %v213_v5  ;;  %1608 = vmatpush1.msk.msra.mxu1 %vm269_vm0, %v214_v8 }
  0x17   : > { %540 = vmatprep.mubr.f32.mxu0 %v1717_v0  ;;  %611 = vmatprep.mubr.f32.mxu1 %v1717_v0 }
  0x18   : > { %1606 = vmatmul.mubr.msk.f32.vlgmr.msra.gmra.mxu0 %vm265_vm1, %v1777_v9  ;;  %1609 = vmatmul.mubr.msk.f32.vlgmr.msra.gmra.mxu1 %vm265_vm1, %v1777_v9 }
  0x19   : > { %1610 = vmatprep.subr.msk.mxu0 %vm269_vm0, %v253_v14  ;;  %1613 = vmatprep.subr.msk.mxu1 %vm269_vm0, %v254_v15 }
  0x1a   : > { %1611 = vmatpush1.msk.msra.mxu0 %vm269_vm0, %v215_v12  ;;  %1614 = vmatpush1.msk.msra.mxu1 %vm269_vm0, %v216_v13 }
  0x1b   : > { %682 = vmatprep.mubr.f32.mxu0 %v1717_v0  ;;  %753 = vmatprep.mubr.f32.mxu1 %v1717_v0 }
  0x1c   : > { %1612 = vmatmul.mubr.msk.f32.vlgmr.msra.gmra.mxu0 %vm265_vm1, %v1777_v9  ;;  %1615 = vmatmul.mubr.msk.f32.vlgmr.msra.gmra.mxu1 %vm265_vm1, %v1777_v9 }
  0x1d   : > { %1616 = vmatprep.subr.msk.mxu0 %vm269_vm0, %v255_v18  ;;  %1619 = vmatprep.subr.msk.mxu1 %vm269_vm0, %v256_v19 }
  0x1e   : > { %1617 = vmatpush1.msk.msra.mxu0 %vm269_vm0, %v217_v16  ;;  %1620 = vmatpush1.msk.msra.mxu1 %vm269_vm0, %v218_v17 }
  0x1f   : > { %824 = vmatprep.mubr.f32.mxu0 %v1717_v0  ;;  %895 = vmatprep.mubr.f32.mxu1 %v1717_v0 }
  0x20   : > { %1618 = vmatmul.mubr.msk.f32.vlgmr.msra.gmra.mxu0 %vm265_vm1, %v1777_v9  ;;  %1621 = vmatmul.mubr.msk.f32.vlgmr.msra.gmra.mxu1 %vm265_vm1, %v1777_v9 }
  0x21   : > { %1622 = vmatprep.subr.msk.mxu0 %vm269_vm0, %v257_v22  ;;  %1625 = vmatprep.subr.msk.mxu1 %vm269_vm0, %v258_v23 }
  0x22   : > { %1623 = vmatpush1.msk.msra.mxu0 %vm269_vm0, %v219_v20  ;;  %1626 = vmatpush1.msk.msra.mxu1 %vm269_vm0, %v220_v21 }
  0x23   : > { %966 = vmatprep.mubr.f32.mxu0 %v1717_v0  ;;  %1037 = vmatprep.mubr.f32.mxu1 %v1717_v0 }
  0x24   : > { %1624 = vmatmul.mubr.msk.f32.vlgmr.msra.gmra.mxu0 %vm265_vm1, %v1777_v9  ;;  %1627 = vmatmul.mubr.msk.f32.vlgmr.msra.gmra.mxu1 %vm265_vm1, %v1777_v9 }
  0x25   : > { %1628 = vmatprep.subr.msk.mxu0 %vm269_vm0, %v259_v26  ;;  %1631 = vmatprep.subr.msk.mxu1 %vm269_vm0, %v260_v27 }
  0x26   : > { %1629 = vmatpush1.msk.msra.mxu0 %vm269_vm0, %v221_v24  ;;  %1632 = vmatpush1.msk.msra.mxu1 %vm269_vm0, %v222_v25 }
  0x27   : > { %1108 = vmatprep.mubr.f32.mxu0 %v1717_v0  ;;  %1179 = vmatprep.mubr.f32.mxu1 %v1717_v0 }
  0x28   : > { %1630 = vmatmul.mubr.msk.f32.vlgmr.msra.gmra.mxu0 %vm265_vm1, %v1777_v9  ;;  %1633 = vmatmul.mubr.msk.f32.vlgmr.msra.gmra.mxu1 %vm265_vm1, %v1777_v9 }
  0x29   : > { %1634 = vmatprep.subr.msk.mxu0 %vm269_vm0, %v261_v30  ;;  %1637 = vmatprep.subr.msk.mxu1 %vm269_vm0, %v262_v31 }
  0x2a   : > { %1635 = vmatpush1.msk.msra.mxu0 %vm269_vm0, %v223_v28  ;;  %1638 = vmatpush1.msk.msra.mxu1 %vm269_vm0, %v224_v29 }
  0x2b   : > { %1250 = vmatprep.mubr.f32.mxu0 %v1717_v0  ;;  %1321 = vmatprep.mubr.f32.mxu1 %v1717_v0 }
  0x2c   : > { %1636 = vmatmul.mubr.msk.f32.vlgmr.msra.gmra.mxu0 %vm265_vm1, %v1777_v9  ;;  %1639 = vmatmul.mubr.msk.f32.vlgmr.msra.gmra.mxu1 %vm265_vm1, %v1777_v9 }
  0x2d   : > { %1640 = vmatprep.subr.msk.mxu0 %vm269_vm0, %v263_v34  ;;  %1643 = vmatprep.subr.msk.mxu1 %vm269_vm0, %v264_v35 }
  0x2e   : > { %1641 = vmatpush1.msk.msra.mxu0 %vm269_vm0, %v225_v32  ;;  %1644 = vmatpush1.msk.msra.mxu1 %vm269_vm0, %v226_v33 }
  0x2f   : > { %1392 = vmatprep.mubr.f32.mxu0 %v1717_v0  ;;  %1463 = vmatprep.mubr.f32.mxu1 %v1717_v0 }
  0x30   : > { %1642 = vmatmul.mubr.msk.f32.vlgmr.msra.gmra.mxu0 %vm265_vm1, %v1777_v9  ;;  %1645 = vmatmul.mubr.msk.f32.vlgmr.msra.gmra.mxu1 %vm265_vm1, %v1777_v9 }
  0x8a   : > { %v1870_v36 = vpop.permute.xlu0 %230 }
  0xd4   : > { %v400_v37 = vpop.f32.mrf.mxu0  ;;  %v471_v38 = vpop.f32.mrf.mxu1 }
  0xd5   : > { %v401_v39 = vadd.f32 %v400_v37, %v1870_v36  ;;  %v472_v40 = vadd.f32 %v471_v38, %v1870_v36 }
  0xd6   : > { %v402_v41 = vpop.f32.mrf.mxu0  ;;  %v473_v42 = vpop.f32.mrf.mxu1 }
  0xd7   : > { %1470 = vst [vmem:[%s1875_s27] sm:$0xff] %v401_v39  ;;  %1472 = vst [vmem:[%s1875_s27 + $0x10] sm:$0xff] %v472_v40  ;;  %v403_v43 = vadd.f32 %v402_v41, %v1870_v36  ;;  %v474_v44 = vadd.f32 %v473_v42, %v1870_v36 }
  0xd8   : > { %v542_v45 = vpop.f32.mrf.mxu0  ;;  %v613_v46 = vpop.f32.mrf.mxu1 }
  0xd9   : > { %1471 = vst [vmem:[%s1875_s27 + $0x8] sm:$0xff] %v403_v43  ;;  %1473 = vst [vmem:[%s1875_s27 + $0x18] sm:$0xff] %v474_v44  ;;  %v543_v47 = vadd.f32 %v542_v45, %v1870_v36  ;;  %v614_v48 = vadd.f32 %v613_v46, %v1870_v36 }
  0xda   : > { %v544_v49 = vpop.f32.mrf.mxu0  ;;  %v615_v50 = vpop.f32.mrf.mxu1 }
  0xdb   : > { %1474 = vst [vmem:[%s1875_s27 + $0x20] sm:$0xff] %v543_v47  ;;  %1476 = vst [vmem:[%s1875_s27 + $0x30] sm:$0xff] %v614_v48  ;;  %v545_v51 = vadd.f32 %v544_v49, %v1870_v36  ;;  %v616_v52 = vadd.f32 %v615_v50, %v1870_v36 }
  0xdc   : > { %v684_v53 = vpop.f32.mrf.mxu0  ;;  %v755_v54 = vpop.f32.mrf.mxu1 }
  0xdd   : > { %1475 = vst [vmem:[%s1875_s27 + $0x28] sm:$0xff] %v545_v51  ;;  %1477 = vst [vmem:[%s1875_s27 + $0x38] sm:$0xff] %v616_v52  ;;  %v685_v55 = vadd.f32 %v684_v53, %v1870_v36  ;;  %v756_v56 = vadd.f32 %v755_v54, %v1870_v36 }
  0xde   : > { %v686_v57 = vpop.f32.mrf.mxu0  ;;  %v757_v58 = vpop.f32.mrf.mxu1 }
  0xdf   : > { %1478 = vst [vmem:[%s1875_s27 + $0x40] sm:$0xff] %v685_v55  ;;  %1480 = vst [vmem:[%s1875_s27 + $0x50] sm:$0xff] %v756_v56  ;;  %v687_v59 = vadd.f32 %v686_v57, %v1870_v36  ;;  %v758_v60 = vadd.f32 %v757_v58, %v1870_v36 }
  0xe0   : > { %v826_v61 = vpop.f32.mrf.mxu0  ;;  %v897_v62 = vpop.f32.mrf.mxu1 }
  0xe1   : > { %1479 = vst [vmem:[%s1875_s27 + $0x48] sm:$0xff] %v687_v59  ;;  %1481 = vst [vmem:[%s1875_s27 + $0x58] sm:$0xff] %v758_v60  ;;  %v827_v63 = vadd.f32 %v826_v61, %v1870_v36  ;;  %v898_v0 = vadd.f32 %v897_v62, %v1870_v36 }
  0xe2   : > { %v828_v1 = vpop.f32.mrf.mxu0  ;;  %v899_v2 = vpop.f32.mrf.mxu1 }
  0xe3   : > { %1482 = vst [vmem:[%s1875_s27 + $0x60] sm:$0xff] %v827_v63  ;;  %1484 = vst [vmem:[%s1875_s27 + $0x70] sm:$0xff] %v898_v0  ;;  %v829_v3 = vadd.f32 %v828_v1, %v1870_v36  ;;  %v900_v4 = vadd.f32 %v899_v2, %v1870_v36 }
  0xe4   : > { %v968_v5 = vpop.f32.mrf.mxu0  ;;  %v1039_v6 = vpop.f32.mrf.mxu1 }
  0xe5   : > { %1483 = vst [vmem:[%s1875_s27 + $0x68] sm:$0xff] %v829_v3  ;;  %1485 = vst [vmem:[%s1875_s27 + $0x78] sm:$0xff] %v900_v4  ;;  %v969_v7 = vadd.f32 %v968_v5, %v1870_v36  ;;  %v1040_v8 = vadd.f32 %v1039_v6, %v1870_v36 }
  0xe6   : > { %v970_v9 = vpop.f32.mrf.mxu0  ;;  %v1041_v10 = vpop.f32.mrf.mxu1 }
  0xe7   : > { %1486 = vst [vmem:[%s1875_s27 + $0x80] sm:$0xff] %v969_v7  ;;  %1488 = vst [vmem:[%s1875_s27 + $0x90] sm:$0xff] %v1040_v8  ;;  %v971_v11 = vadd.f32 %v970_v9, %v1870_v36  ;;  %v1042_v12 = vadd.f32 %v1041_v10, %v1870_v36 }
  0xe8   : > { %v1110_v13 = vpop.f32.mrf.mxu0  ;;  %v1181_v14 = vpop.f32.mrf.mxu1 }
  0xe9   : > { %1487 = vst [vmem:[%s1875_s27 + $0x88] sm:$0xff] %v971_v11  ;;  %1489 = vst [vmem:[%s1875_s27 + $0x98] sm:$0xff] %v1042_v12  ;;  %v1111_v15 = vadd.f32 %v1110_v13, %v1870_v36  ;;  %v1182_v16 = vadd.f32 %v1181_v14, %v1870_v36 }
  0xea   : > { %v1112_v17 = vpop.f32.mrf.mxu0  ;;  %v1183_v18 = vpop.f32.mrf.mxu1 }
  0xeb   : > { %1490 = vst [vmem:[%s1875_s27 + $0xa0] sm:$0xff] %v1111_v15  ;;  %1492 = vst [vmem:[%s1875_s27 + $0xb0] sm:$0xff] %v1182_v16  ;;  %v1113_v19 = vadd.f32 %v1112_v17, %v1870_v36  ;;  %v1184_v20 = vadd.f32 %v1183_v18, %v1870_v36 }
  0xec   : > { %v1252_v21 = vpop.f32.mrf.mxu0  ;;  %v1323_v22 = vpop.f32.mrf.mxu1 }
  0xed   : > { %1491 = vst [vmem:[%s1875_s27 + $0xa8] sm:$0xff] %v1113_v19  ;;  %1493 = vst [vmem:[%s1875_s27 + $0xb8] sm:$0xff] %v1184_v20  ;;  %v1253_v23 = vadd.f32 %v1252_v21, %v1870_v36  ;;  %v1324_v24 = vadd.f32 %v1323_v22, %v1870_v36 }
  0xee   : > { %v1254_v25 = vpop.f32.mrf.mxu0  ;;  %v1325_v26 = vpop.f32.mrf.mxu1 }
  0xef   : > { %1494 = vst [vmem:[%s1875_s27 + $0xc0] sm:$0xff] %v1253_v23  ;;  %1496 = vst [vmem:[%s1875_s27 + $0xd0] sm:$0xff] %v1324_v24  ;;  %v1255_v27 = vadd.f32 %v1254_v25, %v1870_v36  ;;  %v1326_v28 = vadd.f32 %v1325_v26, %v1870_v36 }
  0xf0   : > { %v1394_v29 = vpop.f32.mrf.mxu0  ;;  %v1465_v30 = vpop.f32.mrf.mxu1 }
  0xf1   : > { %1495 = vst [vmem:[%s1875_s27 + $0xc8] sm:$0xff] %v1255_v27  ;;  %1497 = vst [vmem:[%s1875_s27 + $0xd8] sm:$0xff] %v1326_v28  ;;  %v1395_v31 = vadd.f32 %v1394_v29, %v1870_v36  ;;  %v1466_v32 = vadd.f32 %v1465_v30, %v1870_v36 }
  0xf2   : > { %v1396_v33 = vpop.f32.mrf.mxu0  ;;  %v1467_v34 = vpop.f32.mrf.mxu1 }
  0xf3   : > { %1498 = vst [vmem:[%s1875_s27 + $0xe0] sm:$0xff] %v1395_v31  ;;  %1500 = vst [vmem:[%s1875_s27 + $0xf0] sm:$0xff] %v1466_v32  ;;  %v1397_v35 = vadd.f32 %v1396_v33, %v1870_v36  ;;  %v1468_v37 = vadd.f32 %v1467_v34, %v1870_v36 }
  0xf5   : > { %1499 = vst [vmem:[%s1875_s27 + $0xe8] sm:$0xff] %v1397_v35  ;;  %1501 = vst [vmem:[%s1875_s27 + $0xf8] sm:$0xff] %v1468_v37 }
  0xf6 PF: > { %s13_s14 = sadd.s32 1, %s1715_s14   ;;  %s1954_s12 = smov %s1711_s13 }
  0xf7   : > { %p10_p5 = scmp.ge.s32.totalorder %s13_s14, 4   ;;  %s1955_s13 = smov %s1957_s15 }
  0xf9   :  { %12 = sbr.rel (!%p10_p5) target bundleno = 2 (0x2), region = 62 }

</bundles_post_ra>
